<compile_context>
chip_gen: v7x
topology: tpu7x:2x2x1
jax: 0.10.0
libtpu: 0.0.40
codegen_flags: <defaults>
</compile_context>

<pallas_src>
import functools

import jax
import jax.numpy as jnp
from jax.experimental import pallas as pl
from jax.experimental.pallas import tpu as pltpu


def _round_up(x, m):
    return ((x + m - 1) // m) * m


def _vmem_capacity_bytes():
    try:
        return int(pltpu.get_tpu_info().vmem_capacity_bytes)
    except Exception:
        return 64 * 1024 * 1024  # conservative fallback (v7x per-core VMEM)


def _plan_vocab_tiles(V, E, H1, H2, S, B_pad, vmem):
    """Returns (tn, V_pad, fused)."""
    budget = int(vmem * 0.6)  # headroom for compiler scratch / semaphores
    V128 = _round_up(V, 128)

    # Fused (no-grid) path: whole model resident in VMEM at once.
    fused_bytes = (4 * S * B_pad * E                       # embeddings (f32)
                   + 2 * (E * H1 + H1 * H2 + H2 * V128)    # bf16 weights
                   + 4 * (H1 + H2 + V128)                  # f32 biases
                   + 4 * B_pad * V128)                     # f32 logits
    if fused_bytes <= budget:
        return V128, V128, True

    # Vocab-tiled head: per-column cost of the double-buffered streamed blocks
    # (w3 bf16, b3 f32, logits f32) plus the resident h2 block (+ margin).
    resident = 4 * B_pad * H2
    per_col = 2 * (H2 * 2 + 4 + B_pad * 4)
    tn = (budget - resident) // per_col
    tn = max(128, min((tn // 128) * 128, V128))
    V_pad = _round_up(V, tn)
    return tn, V_pad, False


# ----------------------------- Pallas kernels ------------------------------ #
def _trunk_math(embs, w1, b1, w2, b2, inv_s):
    # embs: [S, B_pad, E] f32  ->  h2: [B_pad, H2] f32
    # Mean over the sequence: f32 sum over the leading axis, then the exact
    # f32 1/S scale (not folded into a bf16 operand).
    x = jnp.sum(embs, axis=0) * inv_s
    h1 = jnp.dot(x.astype(jnp.bfloat16), w1,
                 preferred_element_type=jnp.float32) + b1
    h1 = jnp.maximum(h1, 0.0)
    h2 = jnp.dot(h1.astype(jnp.bfloat16), w2,
                 preferred_element_type=jnp.float32) + b2
    h2 = jnp.maximum(h2, 0.0)
    return h2


def fused_kernel(embs_ref, w1_ref, b1_ref, w2_ref, b2_ref, w3_ref, b3_ref,
                 out_ref, *, inv_s):
    # Whole model in one invocation (small-model path).
    h2 = _trunk_math(embs_ref[...], w1_ref[...], b1_ref[...],
                     w2_ref[...], b2_ref[...], inv_s)
    out_ref[...] = (
        jnp.dot(h2.astype(jnp.bfloat16), w3_ref[...],
                preferred_element_type=jnp.float32) + b3_ref[...])


def trunk_kernel(embs_ref, w1_ref, b1_ref, w2_ref, b2_ref, h2_ref, *, inv_s):
    # One-shot trunk: mean + Linear/ReLU x2 -> h2 (no grid-carried state).
    h2_ref[...] = _trunk_math(embs_ref[...], w1_ref[...], b1_ref[...],
                              w2_ref[...], b2_ref[...],
                              inv_s).astype(jnp.bfloat16)


def head_kernel(h2_ref, w3_ref, b3_ref, out_ref):
    # Per-vocab-tile output head: logits_tile = h2 @ w3_tile + b3_tile.
    out_ref[...] = (
        jnp.dot(h2_ref[...], w3_ref[...], preferred_element_type=jnp.float32)
        + b3_ref[...])


# ----------------------------- Wrapper ------------------------------------- #
def baseline_ntp_forward(tokens, params, *, tn=None):
    """tokens: int32 [B, S]; returns logits f32 [B, V]."""
    emb_table = params["embedding"]          # [V, E]
    w1, b1 = params["w1"], params["b1"]      # [E, H1], [1, H1]
    w2, b2 = params["w2"], params["b2"]      # [H1, H2], [1, H2]
    w3, b3 = params["w3"], params["b3"]      # [H2, V],  [1, V]

    B, S = tokens.shape
    V, E = emb_table.shape
    H1 = w1.shape[1]
    H2 = w2.shape[1]

    # --- wrapper-side prep (tiny: only B*S embedding rows) ----------------- #
    # Gather exactly the rows we need instead of streaming the [V, E] table
    # or building a dense [B, V] count matrix with a scatter.
    # NOTE: jnp.take clamps out-of-range ids (nn.Embedding would error).
    gathered = jnp.take(emb_table, tokens, axis=0)            # [B, S, E] f32
    embs = jnp.transpose(gathered, (1, 0, 2))                 # [S, B, E]
    B_pad = max(16, _round_up(B, 16))                         # bf16 sublane pack
    embs = jnp.pad(embs, ((0, 0), (0, B_pad - B), (0, 0)))    # [S, B_pad, E]

    bf16 = jnp.bfloat16
    w1_bf, w2_bf, w3_bf = w1.astype(bf16), w2.astype(bf16), w3.astype(bf16)
    inv_s = 1.0 / S

    # --- VMEM-aware tiling plan -------------------------------------------- #
    vmem = _vmem_capacity_bytes()
    vmem_limit = int(vmem * 0.9)
    if tn is None:
        tn, V_pad, fused = _plan_vocab_tiles(V, E, H1, H2, S, B_pad, vmem)
    else:
        assert tn % 128 == 0, tn
        V_pad = _round_up(V, tn)
        fused = False
    n_tiles = V_pad // tn

    if V_pad != V:
        w3_bf = jnp.pad(w3_bf, ((0, 0), (0, V_pad - V)))
        b3 = jnp.pad(b3, ((0, 0), (0, V_pad - V)))

    trunk_flops = 2 * B_pad * (E * H1 + H1 * H2) + S * B_pad * E
    head_flops = 2 * B_pad * H2 * V_pad
    trunk_bytes = (4 * S * B_pad * E + 2 * (E * H1 + H1 * H2)
                   + 4 * (H1 + H2) + 2 * B_pad * H2)
    head_bytes = (2 * B_pad * H2 + 2 * H2 * V_pad + 4 * V_pad
                  + 4 * B_pad * V_pad)

    if fused:
        # Whole model fits in VMEM -> single invocation, no grid.
        out = pl.pallas_call(
            functools.partial(fused_kernel, inv_s=inv_s),
            out_shape=jax.ShapeDtypeStruct((B_pad, V_pad), jnp.float32),
            compiler_params=pltpu.CompilerParams(vmem_limit_bytes=vmem_limit),
            cost_estimate=pl.CostEstimate(
                flops=trunk_flops + head_flops, transcendentals=0,
                bytes_accessed=trunk_bytes + head_bytes),
        )(embs, w1_bf, b1, w2_bf, b2, w3_bf, b3)
        return out[:B, :V]

    # Trunk: one-shot kernel producing h2 (passed to the head as plain input).
    h2 = pl.pallas_call(
        functools.partial(trunk_kernel, inv_s=inv_s),
        out_shape=jax.ShapeDtypeStruct((B_pad, H2), bf16),
        compiler_params=pltpu.CompilerParams(vmem_limit_bytes=vmem_limit),
        cost_estimate=pl.CostEstimate(flops=trunk_flops, transcendentals=0,
                                      bytes_accessed=trunk_bytes),
    )(embs, w1_bf, b1, w2_bf, b2)

    # Head: vocab-tiled, lane-dense output, vocab axis "parallel" so v7x's
    # second TensorCore gets half the tiles. w3/b3/out are the only streamed
    # (double-buffered) blocks; h2 (4 KB) is the only grid-invariant input.
    vtile = lambda j: (0, j)
    out = pl.pallas_call(
        head_kernel,
        out_shape=jax.ShapeDtypeStruct((B_pad, V_pad), jnp.float32),
        grid=(n_tiles,),
        in_specs=[
            pl.BlockSpec((B_pad, H2), lambda j: (0, 0)),   # h2 (invariant)
            pl.BlockSpec((H2, tn), vtile),                 # w3 vocab tile
            pl.BlockSpec((1, tn), vtile),                  # b3 vocab tile
        ],
        out_specs=pl.BlockSpec((B_pad, tn), vtile),
        compiler_params=pltpu.CompilerParams(
            dimension_semantics=("parallel",),
            vmem_limit_bytes=vmem_limit),
        cost_estimate=pl.CostEstimate(flops=head_flops, transcendentals=0,
                                      bytes_accessed=head_bytes),
    )(h2, w3_bf, b3)
    return out[:B, :V]


# ----------------------------- Reference (pure JAX, f32) -------------------- #
def baseline_ntp_reference(tokens, params):
    emb = jnp.take(params["embedding"], tokens, axis=0)
    x = jnp.mean(emb, axis=1)
    h1 = jnp.maximum(x @ params["w1"] + params["b1"], 0.0)
    h2 = jnp.maximum(h1 @ params["w2"] + params["b2"], 0.0)
    return h2 @ params["w3"] + params["b3"]


# ----------------------------- Param init ---------------------------------- #
def init_params(key, vocab_size, embedding_dim, hidden_dims):
    ks = jax.random.split(key, 8)
    h1, h2 = hidden_dims
    scale = 0.02
    return {
        "embedding": scale * jax.random.normal(ks[0], (vocab_size, embedding_dim), jnp.float32),
        "w1": scale * jax.random.normal(ks[1], (embedding_dim, h1), jnp.float32),
        "b1": scale * jax.random.normal(ks[2], (1, h1), jnp.float32),
        "w2": scale * jax.random.normal(ks[3], (h1, h2), jnp.float32),
        "b2": scale * jax.random.normal(ks[4], (1, h2), jnp.float32),
        "w3": scale * jax.random.normal(ks[5], (h2, vocab_size), jnp.float32),
        "b3": scale * jax.random.normal(ks[6], (1, vocab_size), jnp.float32),
    }


# ----------------------------- Main ----------------------------------------- #
if __name__ == "__main__":
    VOCAB_SIZE = 256
    EMBEDDING_DIM = 128
    HIDDEN_DIMS = [256, 128]
    BATCH = 2
    SEQ = 8

    key = jax.random.PRNGKey(0)
    pkey, tkey = jax.random.split(key)

    params = init_params(pkey, VOCAB_SIZE, EMBEDDING_DIM, HIDDEN_DIMS)
    tokens = jax.random.randint(tkey, (BATCH, SEQ), 0, VOCAB_SIZE, dtype=jnp.int32)

    ref = jax.block_until_ready(baseline_ntp_reference(tokens, params))

    # Default plan: the whole toy model fits VMEM -> single fused invocation.
    logits = jax.block_until_ready(baseline_ntp_forward(tokens, params))
    assert logits.shape == (BATCH, VOCAB_SIZE), logits.shape
    assert jnp.allclose(logits, ref, atol=5e-3, rtol=5e-2), "fused path mismatch"

    # Forced tn=128 exercises the trunk kernel + vocab-tiled "parallel" head.
    logits2 = jax.block_until_ready(baseline_ntp_forward(tokens, params, tn=128))
    assert logits2.shape == (BATCH, VOCAB_SIZE), logits2.shape
    assert jnp.allclose(logits2, ref, atol=5e-3, rtol=5e-2), "tiled path mismatch"

    print("KERNEL_OK")
</pallas_src>

<mosaic_0001>
module attributes {stable_mosaic.version = 11 : i64} {
  func.func @fused_kernel(%arg0: memref<8x16x128xf32, #tpu.memory_space<vmem>>, %arg1: memref<128x256xbf16, #tpu.memory_space<vmem>>, %arg2: memref<1x256xf32, #tpu.memory_space<vmem>>, %arg3: memref<256x128xbf16, #tpu.memory_space<vmem>>, %arg4: memref<1x128xf32, #tpu.memory_space<vmem>>, %arg5: memref<128x256xbf16, #tpu.memory_space<vmem>>, %arg6: memref<1x256xf32, #tpu.memory_space<vmem>>, %arg7: memref<16x256xf32, #tpu.memory_space<vmem>>) attributes {dimension_semantics = [], scalar_prefetch = 0 : i64, scratch_operands = 0 : i64, tpu.core_type = #tpu.core_type<tc>} {
    %c0 = arith.constant 0 : index
    %c0_0 = arith.constant 0 : index
    %c0_1 = arith.constant 0 : index
    %0 = vector.load %arg0[%c0, %c0_0, %c0_1] : memref<8x16x128xf32, #tpu.memory_space<vmem>>, vector<8x16x128xf32>
    %c0_2 = arith.constant 0 : index
    %c0_3 = arith.constant 0 : index
    %1 = vector.load %arg1[%c0_2, %c0_3] : memref<128x256xbf16, #tpu.memory_space<vmem>>, vector<128x256xbf16>
    %c0_4 = arith.constant 0 : index
    %c0_5 = arith.constant 0 : index
    %2 = vector.load %arg2[%c0_4, %c0_5] : memref<1x256xf32, #tpu.memory_space<vmem>>, vector<1x256xf32>
    %c0_6 = arith.constant 0 : index
    %c0_7 = arith.constant 0 : index
    %3 = vector.load %arg3[%c0_6, %c0_7] : memref<256x128xbf16, #tpu.memory_space<vmem>>, vector<256x128xbf16>
    %c0_8 = arith.constant 0 : index
    %c0_9 = arith.constant 0 : index
    %4 = vector.load %arg4[%c0_8, %c0_9] : memref<1x128xf32, #tpu.memory_space<vmem>>, vector<1x128xf32>
    %cst = arith.constant dense<0.000000e+00> : vector<16x128xf32>
    %5 = vector.multi_reduction <add>, %0, %cst [0] : vector<8x16x128xf32> to vector<16x128xf32>
    %cst_10 = arith.constant 1.250000e-01 : f32
    %6 = vector.broadcast %cst_10 : f32 to vector<16x128xf32>
    %7 = arith.mulf %5, %6 : vector<16x128xf32>
    %8 = arith.truncf %7 : vector<16x128xf32> to vector<16x128xbf16>
    %cst_11 = arith.constant dense<0.000000e+00> : vector<16x256xf32>
    %9 = tpu.matmul %8, %1, %cst_11 {dimension_numbers = #tpu.dot_dimension_numbers<[1], [0], [0], [1], [0, 0, 1, 1], [], []>} : vector<16x128xbf16>, vector<128x256xbf16>, vector<16x256xf32> -> vector<16x256xf32>
    %10 = vector.broadcast %2 : vector<1x256xf32> to vector<16x256xf32>
    %11 = arith.addf %9, %10 : vector<16x256xf32>
    %cst_12 = arith.constant 0.000000e+00 : f32
    %12 = vector.broadcast %cst_12 : f32 to vector<16x256xf32>
    %13 = arith.maximumf %11, %12 : vector<16x256xf32>
    %14 = arith.truncf %13 : vector<16x256xf32> to vector<16x256xbf16>
    %cst_13 = arith.constant dense<0.000000e+00> : vector<16x128xf32>
    %15 = tpu.matmul %14, %3, %cst_13 {dimension_numbers = #tpu.dot_dimension_numbers<[1], [0], [0], [1], [0, 0, 1, 1], [], []>} : vector<16x256xbf16>, vector<256x128xbf16>, vector<16x128xf32> -> vector<16x128xf32>
    %16 = vector.broadcast %4 : vector<1x128xf32> to vector<16x128xf32>
    %17 = arith.addf %15, %16 : vector<16x128xf32>
    %cst_14 = arith.constant 0.000000e+00 : f32
    %18 = vector.broadcast %cst_14 : f32 to vector<16x128xf32>
    %19 = arith.maximumf %17, %18 : vector<16x128xf32>
    %20 = arith.truncf %19 : vector<16x128xf32> to vector<16x128xbf16>
    %c0_15 = arith.constant 0 : index
    %c0_16 = arith.constant 0 : index
    %21 = vector.load %arg5[%c0_15, %c0_16] : memref<128x256xbf16, #tpu.memory_space<vmem>>, vector<128x256xbf16>
    %cst_17 = arith.constant dense<0.000000e+00> : vector<16x256xf32>
    %22 = tpu.matmul %20, %21, %cst_17 {dimension_numbers = #tpu.dot_dimension_numbers<[1], [0], [0], [1], [0, 0, 1, 1], [], []>} : vector<16x128xbf16>, vector<128x256xbf16>, vector<16x256xf32> -> vector<16x256xf32>
    %c0_18 = arith.constant 0 : index
    %c0_19 = arith.constant 0 : index
    %23 = vector.load %arg6[%c0_18, %c0_19] : memref<1x256xf32, #tpu.memory_space<vmem>>, vector<1x256xf32>
    %24 = vector.broadcast %23 : vector<1x256xf32> to vector<16x256xf32>
    %25 = arith.addf %22, %24 : vector<16x256xf32>
    %c0_20 = arith.constant 0 : index
    %c0_21 = arith.constant 0 : index
    %26 = vector.load %arg7[%c0_20, %c0_21] : memref<16x256xf32, #tpu.memory_space<vmem>>, vector<16x256xf32>
    tpu.vector_store %arg7[%c0_20, %c0_21], %25 {strides = array<i32>} : memref<16x256xf32, #tpu.memory_space<vmem>>, vector<16x256xf32>,
    return
  }
}

</mosaic_0001>

<bundles_post_ra>
// kernel: tpu_custom_call.1
= control target key start
LH: loop header
LB: loop body
LE: loop exit
PB: predicated region body
PF: predicated region fallthrough
CT: control target
= control target key end

     0   :  { %12 = vsyncpa [#allocation3], 0  ;;  %s1030_s0 = inlined_call_operand.hbm [shape: f32[8,16,128], index: 0, kind: input, shape index: {}]   ;;  %s1031_s1 = inlined_call_operand.hbm [shape: bf16[128,256], index: 1, kind: input, shape index: {}]   ;;  %s1032_s2 = inlined_call_operand.vmem [shape: f32[1,256], index: 2, kind: input, shape index: {}]   ;;  %s1033_s3 = inlined_call_operand.hbm [shape: bf16[256,128], index: 3, kind: input, shape index: {}]   ;;  %s1034_s4 = inlined_call_operand.vmem [shape: f32[1,128], index: 4, kind: input, shape index: {}]   ;;  %s1035_s5 = inlined_call_operand.hbm [shape: bf16[128,256], index: 5, kind: input, shape index: {}]   ;;  %s1036_s6 = inlined_call_operand.vmem [shape: f32[1,256], index: 6, kind: input, shape index: {}]   ;;  %s1037_s7 = inlined_call_operand.hbm [shape: f32[16,256], index: 7, kind: output, shape index: {}]  }
   0x1   :  { %13 = vsyncpa [#allocation6], 0 }
   0x2   :  { %14 = vsyncpa [#allocation9], 0 }
   0x3   :  { %15 = vsyncpa [#allocation4], 0  ;;  %s891_s24 = smov [#allocation5]   ;;  %s892_s26 = smov [#allocation2]  }
   0x4   :  { %s33_s25 = sshll.u32 %s891_s24, 4  ;;  %s21_s27 = sshll.u32 %s892_s26, 4  ;;  %s34_s25 = int_to_ptr.vmem [resolvable:$true] %s33_s25  ;;  %s943_s27 = int_to_ptr.vmem [resolvable:$true] %s21_s27 }
   0x5   :  { %s773_s30 = scalar_lea.hbm %s1031_s1, 2048 }
   0x6   :  { %p774_p0 = scmp.ne.s32.totalorder %s1031_s1, %s773_s30  ;;  %p777_p1 = scmp.lt.u32.totalorder %s773_s30, %s1031_s1 }
   0x8   :  { %p779_p2 = pnand %p777_p1, %p774_p0 }
   0xa   :  { %782 = shalt.err (!%p779_p2)
}
   0xb   :  { %s783_s12 = scalar_lea.vmem %s34_s25, 2048  ;;  %p788_p4 = scmp.lt.s32.totalorder %s34_s25, %s34_s25 }
   0xc   :  { %p784_p3 = scmp.ne.s32.totalorder %s34_s25, %s783_s12  ;;  %p789_p5 = scmp.lt.s32.totalorder %s783_s12, %s783_s12 }
   0xe   :  { %p790_p6 = por %p789_p5, %p788_p4 }
  0x10   :  { %p791_p7 = pnand %p790_p6, %p784_p3 }
  0x12   :  { %794 = shalt.err (!%p791_p7)
}
  0x13   :  { %s893_s13 = smov 128   ;;  %s894_s14 = smov 8  }
  0x14   :  { %39 = dma.hbm_to_vmem [thread:$0]  %s1031_s1, 2048, %s34_s25, [#allocation6], %s893_s13, %s893_s13, %s894_s14  }
  0x15   :  { %s795_s19 = scalar_lea.hbm %s1030_s0, 2048 }
  0x16   :  { %p796_p8 = scmp.ne.s32.totalorder %s1030_s0, %s795_s19  ;;  %p799_p9 = scmp.lt.u32.totalorder %s795_s19, %s1030_s0 }
  0x18   :  { %p801_p10 = pnand %p799_p9, %p796_p8 }
  0x1a   :  { %804 = shalt.err (!%p801_p10)
}
  0x1b   :  { %s805_s24 = scalar_lea.vmem %s943_s27, 2048  ;;  %p810_p12 = scmp.lt.s32.totalorder %s943_s27, %s943_s27 }
  0x1c   :  { %p806_p11 = scmp.ne.s32.totalorder %s943_s27, %s805_s24  ;;  %p811_p13 = scmp.lt.s32.totalorder %s805_s24, %s805_s24 }
  0x1e   :  { %p812_p0 = por %p811_p13, %p810_p12 }
  0x20   :  { %p813_p1 = pnand %p812_p0, %p806_p11 }
  0x22   :  { %816 = shalt.err (!%p813_p1)
}
  0x23   :  { %27 = dma.hbm_to_vmem [thread:$0]  %s1030_s0, 2048, %s943_s27, [#allocation3], %s893_s13, %s893_s13, %s894_s14  }
  0x24   :  { %s895_s26 = smov [#allocation7]   ;;  %s817_s8 = scalar_lea.hbm %s1033_s3, 2048 }
  0x25   :  { %s47_s28 = sshll.u32 %s895_s26, 4  ;;  %p818_p2 = scmp.ne.s32.totalorder %s1033_s3, %s817_s8  ;;  %s48_s28 = int_to_ptr.vmem [resolvable:$true] %s47_s28 }
  0x26   :  { %p821_p3 = scmp.lt.u32.totalorder %s817_s8, %s1033_s3 }
  0x28   :  { %p823_p4 = pnand %p821_p3, %p818_p2 }
  0x2a   :  { %826 = shalt.err (!%p823_p4)
}
  0x2b   :  { %s827_s15 = scalar_lea.vmem %s48_s28, 2048  ;;  %p832_p6 = scmp.lt.s32.totalorder %s48_s28, %s48_s28 }
  0x2c   :  { %p828_p5 = scmp.ne.s32.totalorder %s48_s28, %s827_s15  ;;  %p833_p7 = scmp.lt.s32.totalorder %s827_s15, %s827_s15 }
  0x2e   :  { %p834_p8 = por %p833_p7, %p832_p6 }
  0x30   :  { %p835_p9 = pnand %p834_p8, %p828_p5 }
  0x32   :  { %838 = shalt.err (!%p835_p9)
}
  0x33   :  { %s896_s0 = smov 64   ;;  %s897_s27 = smov 4  }
  0x34   :  { %53 = dma.hbm_to_vmem [thread:$0]  %s1033_s3, 2048, %s48_s28, [#allocation6], %s896_s0, %s896_s0, %s897_s27  }
  0x35   :  { %s898_s18 = smov [#allocation8]   ;;  %s839_s22 = scalar_lea.hbm %s1035_s5, 2048 }
  0x36   :  { %s61_s19 = sshll.u32 %s898_s18, 4  ;;  %p840_p10 = scmp.ne.s32.totalorder %s1035_s5, %s839_s22  ;;  %s62_s19 = int_to_ptr.vmem [resolvable:$true] %s61_s19 }
  0x37   :  { %p843_p11 = scmp.lt.u32.totalorder %s839_s22, %s1035_s5 }
  0x39   :  { %p845_p12 = pnand %p843_p11, %p840_p10 }
  0x3b   :  { %848 = shalt.err (!%p845_p12)
}
  0x3c   :  { %s849_s26 = scalar_lea.vmem %s62_s19, 2048  ;;  %p854_p0 = scmp.lt.s32.totalorder %s62_s19, %s62_s19 }
  0x3d   :  { %p850_p13 = scmp.ne.s32.totalorder %s62_s19, %s849_s26  ;;  %p855_p1 = scmp.lt.s32.totalorder %s849_s26, %s849_s26 }
  0x3f   :  { %p856_p2 = por %p855_p1, %p854_p0 }
  0x41   :  { %p857_p3 = pnand %p856_p2, %p850_p13 }
  0x43   :  { %860 = shalt.err (!%p857_p3)
}
  0x44   :  { %67 = dma.hbm_to_vmem [thread:$0]  %s1035_s5, 2048, %s62_s19, [#allocation9], %s893_s13, %s893_s13, %s894_s14  }
  0x45   :  { %883 = dma.done.wait [#allocation3], 2048  }
  0x46   :  { %884 = vsyncadd [#allocation3], 4294965248 }
  0x47   :  { %885 = dma.done.wait [#allocation6], 4096  }
  0x48   :  { %886 = vsyncadd [#allocation6], 4294963200 }
  0x49   :  { %887 = dma.done.wait [#allocation9], 2048  }
  0x4a   :  { %888 = vsyncadd [#allocation9], 4294965248  ;;  %v899_v0 = vmov 0   ;;  %v709_v1 = vld [vmem:[#allocation5 + $0x4] ss:$8 sps:$4 sm:$0xff]   ;;  %v85_v11 = vld [vmem:[#allocation2 + $0x10] sm:$0xff] }
  0x4b   :  { %289 = vmatprep.mubr.bf16.mxu0 %v899_v0  ;;  %v711_v2 = vld [vmem:[#allocation5] ss:$8 sps:$4 sm:$0xff]   ;;  %257 = vmatprep.subr.bf16.mxu0 %v709_v1  ;;  %v712_v3 = vld [vmem:[#allocation5 + $0x14] ss:$8 sps:$4 sm:$0xff]   ;;  %v714_v4 = vld [vmem:[#allocation5 + $0x10] ss:$8 sps:$4 sm:$0xff]  }
  0x4c   :  { %258 = vmatpush1.bf16.msra.mxu0 %v711_v2  ;;  %v715_v5 = vld [vmem:[#allocation5 + $0x24] ss:$8 sps:$4 sm:$0xff]   ;;  %v717_v6 = vld [vmem:[#allocation5 + $0x20] ss:$8 sps:$4 sm:$0xff]   ;;  %v718_v7 = vld [vmem:[#allocation5 + $0x34] ss:$8 sps:$4 sm:$0xff]  }
  0x4d   :  { %259 = vmatprep.subr.bf16.mxu0 %v712_v3  ;;  %v720_v8 = vld [vmem:[#allocation5 + $0x30] ss:$8 sps:$4 sm:$0xff]   ;;  %v83_v9 = vld [vmem:[#allocation2] sm:$0xff]  ;;  %v84_v10 = vld [vmem:[#allocation2 + $0x8] sm:$0xff]  ;;  %s900_s8 = smov [#allocation10]  }
  0x4e   :  { %v86_v12 = vld [vmem:[#allocation2 + $0x18] sm:$0xff]  ;;  %v721_v13 = vld [vmem:[#allocation5 + $0x44] ss:$8 sps:$4 sm:$0xff]   ;;  %v149_v16 = vadd.f32 %v85_v11, %v83_v9  ;;  %v89_v18 = vld [vmem:[#allocation2 + $0x30] sm:$0xff] }
  0x4f   :  { %v87_v14 = vld [vmem:[#allocation2 + $0x20] sm:$0xff]  ;;  %v88_v15 = vld [vmem:[#allocation2 + $0x28] sm:$0xff]  ;;  %v156_v17 = vadd.f32 %v86_v12, %v84_v10  ;;  %v90_v19 = vld [vmem:[#allocation2 + $0x38] sm:$0xff]  ;;  %v167_v12 = vlaneseq }
  0x50   :  { %260 = vmatpush1.bf16.msra.mxu0 %v714_v4  ;;  %v723_v20 = vld [vmem:[#allocation5 + $0x40] ss:$8 sps:$4 sm:$0xff]   ;;  %v724_v21 = vld [vmem:[#allocation5 + $0x54] ss:$8 sps:$4 sm:$0xff]   ;;  %v150_v23 = vadd.f32 %v149_v16, %v87_v14  ;;  %v726_v31 = vld [vmem:[#allocation5 + $0x50] ss:$8 sps:$4 sm:$0xff]  }
  0x51   :  { %261 = vmatprep.subr.bf16.mxu0 %v715_v5  ;;  %v91_v22 = vld [vmem:[#allocation2 + $0x40] sm:$0xff]  ;;  %v157_v24 = vadd.f32 %v156_v17, %v88_v15  ;;  %v92_v25 = vld [vmem:[#allocation2 + $0x48] sm:$0xff]  ;;  %v93_v26 = vld [vmem:[#allocation2 + $0x50] sm:$0xff] }
  0x52   :  { %v94_v27 = vld [vmem:[#allocation2 + $0x58] sm:$0xff]  ;;  %v151_v28 = vadd.f32 %v150_v23, %v89_v18  ;;  %v733_v30 = vld [vmem:[#allocation7 + $0x40] sm:$0xff]   ;;  %v96_v33 = vld [vmem:[#allocation2 + $0x68] sm:$0xff] }
  0x53   :  { %v158_v29 = vadd.f32 %v157_v24, %v90_v19  ;;  %v95_v32 = vld [vmem:[#allocation2 + $0x60] sm:$0xff]  ;;  %675 = vmatprep.subr.bf16.mxu1 %v733_v30  ;;  %v735_v38 = vld [vmem:[#allocation7 + $0x48] sm:$0xff]   ;;  %v97_v39 = vld [vmem:[#allocation2 + $0x70] sm:$0xff] }
  0x54   :  { %262 = vmatpush1.bf16.msra.mxu0 %v717_v6  ;;  %v734_v34 = vld [vmem:[#allocation7] sm:$0xff]   ;;  %v152_v36 = vadd.f32 %v151_v28, %v91_v22  ;;  %v736_v40 = vld [vmem:[#allocation7 + $0x8] sm:$0xff]   ;;  %v737_v43 = vld [vmem:[#allocation7 + $0x50] sm:$0xff]  }
  0x55   :  { %263 = vmatprep.subr.bf16.mxu0 %v718_v7  ;;  %v727_v35 = vld [vmem:[#allocation5 + $0x64] ss:$8 sps:$4 sm:$0xff]   ;;  %v159_v37 = vadd.f32 %v158_v29, %v92_v25  ;;  %676 = vmatpush3.bf16.msra.mxu1 %v734_v34  ;;  %v729_v44 = vld [vmem:[#allocation5 + $0x60] ss:$8 sps:$4 sm:$0xff]   ;;  %v98_v45 = vld [vmem:[#allocation2 + $0x78] sm:$0xff] }
  0x56   :  { %v153_v41 = vadd.f32 %v152_v36, %v93_v26  ;;  %677 = vmatprep.subr.bf16.mxu1 %v735_v38  ;;  %v730_v46 = vld [vmem:[#allocation5 + $0x74] ss:$8 sps:$4 sm:$0xff]   ;;  %v732_v53 = vld [vmem:[#allocation5 + $0x70] ss:$8 sps:$4 sm:$0xff]   ;;  %v741_v57 = vld [vmem:[#allocation7 + $0x60] sm:$0xff]  }
  0x57   :  { %v160_v42 = vadd.f32 %v159_v37, %v94_v27  ;;  %v738_v49 = vld [vmem:[#allocation7 + $0x10] sm:$0xff]   ;;  %v739_v52 = vld [vmem:[#allocation7 + $0x58] sm:$0xff]   ;;  %v742_v58 = vld [vmem:[#allocation7 + $0x20] sm:$0xff]  }
  0x58   :  { %264 = vmatpush1.bf16.msra.mxu0 %v720_v8  ;;  %v154_v47 = vadd.f32 %v153_v41, %v95_v32  ;;  %v740_v56 = vld [vmem:[#allocation7 + $0x18] sm:$0xff]   ;;  %v743_v60 = vld [vmem:[#allocation7 + $0x68] sm:$0xff]   ;;  %v745_v62 = vld [vmem:[#allocation7 + $0x70] sm:$0xff]  }
  0x59   :  { %265 = vmatprep.subr.bf16.mxu0 %v721_v13  ;;  %v161_v48 = vadd.f32 %v160_v42, %v96_v33  ;;  %678 = vmatpush3.bf16.msra.mxu1 %v736_v40  ;;  %v744_v61 = vld [vmem:[#allocation7 + $0x28] sm:$0xff]   ;;  %v746_v63 = vld [vmem:[#allocation7 + $0x30] sm:$0xff]   ;;  %v747_v1 = vld [vmem:[#allocation7 + $0x78] sm:$0xff]   ;;  %v168_v13 = vshrl.u32 %v167_v12, 7 }
  0x5a   :  { %v155_v50 = vadd.f32 %v154_v47, %v97_v39  ;;  %679 = vmatprep.subr.bf16.mxu1 %v737_v43  ;;  %v748_v2 = vld [vmem:[#allocation7 + $0x38] sm:$0xff]   ;;  %v749_v3 = vld [vmem:[#allocation8] ss:$8 sps:$4 sm:$0xff]   ;;  %v751_v4 = vld [vmem:[#allocation8 + $0x4] ss:$8 sps:$4 sm:$0xff]  }
  0x5b   :  { %v162_v51 = vadd.f32 %v161_v48, %v98_v45  ;;  %v754_v5 = vld [vmem:[#allocation8 + $0x14] ss:$8 sps:$4 sm:$0xff]   ;;  %v752_v6 = vld [vmem:[#allocation8 + $0x10] ss:$8 sps:$4 sm:$0xff]   ;;  %v757_v7 = vld [vmem:[#allocation8 + $0x24] ss:$8 sps:$4 sm:$0xff]  }
  0x5c   :  { %266 = vmatpush1.bf16.msra.mxu0 %v723_v20  ;;  %v163_v54 = vmul.f32 0.125, %v155_v50  ;;  %v760_v8 = vld [vmem:[#allocation8 + $0x34] ss:$8 sps:$4 sm:$0xff]   ;;  %v758_v9 = vld [vmem:[#allocation8 + $0x30] ss:$8 sps:$4 sm:$0xff]   ;;  %v169_v14 = vsub.s32 0, %v168_v13 }
  0x5d   :  { %267 = vmatprep.subr.bf16.mxu0 %v724_v21  ;;  %v164_v55 = vmul.f32 0.125, %v162_v51  ;;  %680 = vmatpush3.bf16.msra.mxu1 %v738_v49  ;;  %v763_v10 = vld [vmem:[#allocation8 + $0x44] ss:$8 sps:$4 sm:$0xff]   ;;  %v761_v11 = vld [vmem:[#allocation8 + $0x40] ss:$8 sps:$4 sm:$0xff]   ;;  %v173_v16 = vsub.s32 1, %v168_v13 }
  0x5e   :  { %681 = vmatprep.subr.bf16.mxu1 %v739_v52  ;;  %v115_v15 = vld [vmem:[%s1032_s2] sm:$0x3]  ;;  %v766_v33 = vld [vmem:[#allocation8 + $0x54] ss:$8 sps:$4 sm:$0xff]   ;;  %v764_v34 = vld [vmem:[#allocation8 + $0x50] ss:$8 sps:$4 sm:$0xff]  }
  0x5f   :  { %v165_v59 = vpack.c.bf16 %v164_v55, %v163_v54  ;;  %v170_v17 = vrot.slane %v115_v15, %v169_v14  ;;  %v174_v18 = vrot.slane %v115_v15, %v173_v16  ;;  %v767_v36 = vld [vmem:[#allocation8 + $0x60] ss:$8 sps:$4 sm:$0xff]   ;;  %v772_v37 = vld [vmem:[#allocation8 + $0x74] ss:$8 sps:$4 sm:$0xff]   ;;  %v770_v38 = vld [vmem:[#allocation8 + $0x70] ss:$8 sps:$4 sm:$0xff]  }
  0x60   :  { %268 = vmatpush1.bf16.msra.mxu0 %v726_v31  ;;  %v642_v40 = vld [vmem:[%s1034_s4] ss:$0 sm:$0xff]  ;;  %s612_s4 = sshll.u32 %s900_s8, 4  ;;  %s613_s4 = int_to_ptr.vmem [resolvable:$true] %s612_s4 }
  0x61   :  { %269 = vmatprep.subr.bf16.mxu0 %v727_v35  ;;  %682 = vmatpush3.bf16.msra.mxu1 %v740_v56  ;;  %v769_v35 = vld [vmem:[#allocation8 + $0x64] ss:$8 sps:$4 sm:$0xff]   ;;  %v468_v51 = vld [vmem:[%s1036_s6] sm:$0x3]  ;;  %s861_s9 = scalar_lea.vmem %s613_s4, 512  ;;  %p866_p5 = scmp.lt.s32.totalorder %s613_s4, %s613_s4 }
  0x62   :  { %683 = vmatprep.subr.bf16.mxu1 %v741_v57  ;;  %v473_v52 = vrot.slane %v468_v51, %v169_v14  ;;  %p862_p4 = scmp.ne.s32.totalorder %s613_s4, %s861_s9  ;;  %p867_p6 = scmp.lt.s32.totalorder %s861_s9, %s861_s9 }
  0x64   :  { %270 = vmatpush1.bf16.msra.mxu0 %v729_v44  ;;  %p868_p7 = por %p867_p6, %p866_p5 }
  0x65   :  { %271 = vmatprep.subr.bf16.mxu0 %v730_v46  ;;  %684 = vmatpush3.bf16.msra.mxu1 %v742_v58 }
  0x66   :  { %685 = vmatprep.subr.bf16.mxu1 %v743_v60  ;;  %p869_p8 = pnand %p868_p7, %p862_p4 }
  0x68   :  { %272 = vmatpush1.bf16.msra.mxu0 %v732_v53  ;;  %v477_v53 = vrot.slane %v468_v51, %v173_v16 }
  0x69   :  { %686 = vmatpush3.bf16.msra.mxu1 %v744_v61  ;;  %560 = vmatprep.subr.bf16.mxu0 %v751_v4 }
  0x6a   :  { %687 = vmatprep.subr.bf16.mxu1 %v745_v62 }
  0x6b   :  { %290 = vmatmul.mubr.bf16.vlgmr.msra.gmra.mrb[0].mxu0 %v165_v59 }
  0x6c   :  { %592 = vmatprep.mubr.bf16.mxu0 %v899_v0  ;;  %561 = vmatpush1.bf16.msra.mxu0 %v749_v3  ;;  %v755_v0 = vld [vmem:[#allocation8 + $0x20] ss:$8 sps:$4 sm:$0xff]  }
  0x6d   :  { %688 = vmatpush3.bf16.msra.mxu1 %v746_v63  ;;  %562 = vmatprep.subr.bf16.mxu0 %v754_v5 }
  0x6e   :  { %689 = vmatprep.subr.bf16.mxu1 %v747_v1 }
  0x70   :  { %563 = vmatpush1.bf16.msra.mxu0 %v752_v6 }
  0x71   :  { %690 = vmatpush3.bf16.msra.mxu1 %v748_v2  ;;  %564 = vmatprep.subr.bf16.mxu0 %v757_v7 }
  0x74   :  { %565 = vmatpush1.bf16.msra.mxu0 %v755_v0 }
  0x75   :  { %566 = vmatprep.subr.bf16.mxu0 %v760_v8 }
  0x78   :  { %567 = vmatpush1.bf16.msra.mxu0 %v758_v9 }
  0x79   :  { %568 = vmatprep.subr.bf16.mxu0 %v763_v10 }
  0x7c   :  { %569 = vmatpush1.bf16.msra.mxu0 %v761_v11 }
  0x7d   :  { %570 = vmatprep.subr.bf16.mxu0 %v766_v33 }
  0x80   :  { %571 = vmatpush1.bf16.msra.mxu0 %v764_v34 }
  0x81   :  { %572 = vmatprep.subr.bf16.mxu0 %v769_v35 }
  0x84   :  { %573 = vmatpush1.bf16.msra.mxu0 %v767_v36 }
  0x85   :  { %574 = vmatprep.subr.bf16.mxu0 %v772_v37 }
  0x88   :  { %575 = vmatpush1.bf16.msra.mxu0 %v770_v38 }
 0x13e   :  { %v291_v19 = vpop.f32.mrb[0].mxu0 }
 0x13f   :  { %v292_v20 = vadd.f32 %v291_v19, %v170_v17  ;;  %v293_v21 = vpop.f32.mrb[1].mxu0 }
 0x140   :  { %v294_v22 = vadd.f32 %v293_v21, %v174_v18  ;;  %v295_v23 = vpop.f32.mrb[2].mxu0 }
 0x141   :  { %v296_v24 = vadd.f32 %v295_v23, %v170_v17  ;;  %v297_v25 = vpop.f32.mrb[3].mxu0  ;;  %v300_v27 = vmax.f32 %v292_v20, 0.0 }
 0x142   :  { %v298_v26 = vadd.f32 %v297_v25, %v174_v18  ;;  %v301_v29 = vmax.f32 %v294_v22, 0.0 }
 0x143   :  { %v302_v28 = vmax.f32 %v296_v24, 0.0 }
 0x144   :  { %v303_v30 = vmax.f32 %v298_v26, 0.0 }
 0x145   :  { %v304_v31 = vpack.c.bf16 %v302_v28, %v300_v27 }
 0x146   :  { %v305_v32 = vpack.c.bf16 %v303_v30, %v301_v29 }
 0x148   :  { %440 = vmatprep.mubr.bf16.mxu1 %v305_v32 }
 0x149   :  { %441 = vmatmul.mubr.bf16.vlgmr.msra.gmra.mrb[0].mxu1 %v304_v31 }
 0x21c   :  { %v691_v39 = vpop.f32.mrb[0].mxu1 }
 0x21d   :  { %v692_v41 = vpop.f32.mrb[1].mxu1 }
 0x21e   :  { %v693_v42 = vadd.f32 %v692_v41, %v691_v39  ;;  %v694_v43 = vpop.f32.mrb[2].mxu1 }
 0x21f   :  { %v695_v44 = vpop.f32.mrb[3].mxu1 }
 0x220   :  { %v443_v45 = vadd.f32 %v693_v42, %v642_v40  ;;  %v696_v46 = vadd.f32 %v695_v44, %v694_v43 }
 0x222   :  { %v446_v47 = vadd.f32 %v696_v46, %v642_v40  ;;  %v449_v48 = vmax.f32 %v443_v45, 0.0 }
 0x224   :  { %v450_v49 = vmax.f32 %v446_v47, 0.0 }
 0x226   :  { %v451_v50 = vpack.c.bf16 %v450_v49, %v449_v48 }
 0x228   :  { %593 = vmatmul.mubr.bf16.vlgmr.msra.gmra.mrb[4].mxu0 %v451_v50 }
 0x2fb   :  { %v594_v54 = vpop.f32.mrb[4].mxu0 }
 0x2fc   :  { %v595_v55 = vadd.f32 %v594_v54, %v473_v52  ;;  %v596_v56 = vpop.f32.mrb[5].mxu0 }
 0x2fd   :  { %v597_v57 = vadd.f32 %v596_v56, %v477_v53  ;;  %v598_v58 = vpop.f32.mrb[6].mxu0 }
 0x2fe   :  { %603 = vst [vmem:[#allocation10] sm:$0xff] %v595_v55  ;;  %v599_v59 = vadd.f32 %v598_v58, %v473_v52  ;;  %v600_v60 = vpop.f32.mrb[7].mxu0 }
 0x2ff   :  { %604 = vst [vmem:[#allocation10 + $0x8] sm:$0xff] %v597_v57  ;;  %v601_v61 = vadd.f32 %v600_v60, %v477_v53 }
 0x300   :  { %605 = vst [vmem:[#allocation10 + $0x10] sm:$0xff] %v599_v59 }
 0x301   :  { %606 = vst [vmem:[#allocation10 + $0x18] sm:$0xff] %v601_v61 }
 0x302   :  { %872 = shalt.err (!%p869_p8)
}
 0x303   :  { %s873_s11 = scalar_lea.hbm %s1037_s7, 512 }
 0x304   :  { %p874_p9 = scmp.ne.s32.totalorder %s1037_s7, %s873_s11  ;;  %p877_p10 = scmp.lt.u32.totalorder %s873_s11, %s1037_s7 }
 0x306   :  { %p879_p11 = pnand %p877_p10, %p874_p9 }
 0x308   :  { %882 = shalt.err (!%p879_p11)
}
 0x309   :  { %s901_s16 = smov 256   ;;  %s902_s17 = smov 16  }
 0x30a   :  { %618 = dma.vmem_to_hbm [thread:$0]  %s613_s4, 512, %s1037_s7, [#allocation4], %s901_s16, %s901_s16, %s902_s17  }
 0x30b   :  { %889 = dma.done.wait [#allocation4], 512  }
 0x30c   :  { %890 = vsyncadd [#allocation4], 4294966784 }
 0x30d   :  { %622 = vsyncpa [#allocation3], 1 }
 0x30e   :  { %623 = vsyncpa [#allocation6], 1 }
 0x30f   :  { %624 = vsyncpa [#allocation9], 1 }
 0x310   :  { %625 = vsyncpa [#allocation4], 1 }

</bundles_post_ra>
